<compile_context>
chip_gen: v7x
topology: tpu7x:2x2x1
jax: 0.10.0
libtpu: 0.0.40
codegen_flags: <defaults>
</compile_context>

<pallas_src>
import functools

import jax
import jax.numpy as jnp
from jax.experimental import pallas as pl
from jax.experimental.pallas import tpu as pltpu


def _round_up(x, m):
    return ((x + m - 1) // m) * m


def qnetwork_kernel(s_ref, a_ref,
                    w_in_s_ref, w_in_a_ref, b_in_ref,
                    w_hid_ref, b_hid_ref,
                    w_out_ref, b_out_ref,
                    out_ref):
    # Layer 1 (both heads fused along the output dim): xu @ W1||W4 computed as
    # state @ Ws + action @ Wa, avoiding a materialized concat.
    h = (jnp.dot(s_ref[...], w_in_s_ref[...], preferred_element_type=jnp.float32)
         + jnp.dot(a_ref[...], w_in_a_ref[...], preferred_element_type=jnp.float32)
         + b_in_ref[...])
    h = jnp.maximum(h, 0.0)                      # f32 epilogue (VPU)

    # Layer 2: single block-diagonal matmul covering both heads.
    h = h.astype(w_hid_ref.dtype)                # bf16 MXU input when enabled
    h = jnp.dot(h, w_hid_ref[...], preferred_element_type=jnp.float32) + b_hid_ref[...]
    h = jnp.maximum(h, 0.0)

    # Layer 3: one (B, 2) matmul -> column 0 = q1, column 1 = q2.
    h = h.astype(w_out_ref.dtype)
    out = jnp.dot(h, w_out_ref[...], preferred_element_type=jnp.float32) + b_out_ref[...]
    out_ref[...] = out.astype(out_ref.dtype)


def fuse_params(params, num_inputs, compute_dtype=jnp.float32, lane=128):
    """Pack the 6 per-layer (in,out) weights into fused, lane-padded tensors."""
    H = params["w1"].shape[1]
    H2 = 2 * H
    Hp = _round_up(H2, lane)          # fused hidden width padded to 128 lanes
    d_s = num_inputs

    w1, w4 = params["w1"], params["w4"]
    # Layer 1: split rows by state/action, concat heads along the out dim.
    w_in_s = jnp.concatenate([w1[:d_s], w4[:d_s]], axis=1)       # (d_s, 2H)
    w_in_a = jnp.concatenate([w1[d_s:], w4[d_s:]], axis=1)       # (d_a, 2H)
    b_in = jnp.concatenate([params["b1"], params["b4"]], axis=1)  # (1, 2H)

    # Layer 2: block-diagonal so one matmul serves both heads.
    w_hid = jnp.zeros((Hp, Hp), jnp.float32)
    w_hid = w_hid.at[:H, :H].set(params["w2"])
    w_hid = w_hid.at[H:H2, H:H2].set(params["w5"])
    b_hid = jnp.concatenate([params["b2"], params["b5"]], axis=1)  # (1, 2H)

    # Layer 3: (Hp, 2) with w3 feeding column 0 and w6 feeding column 1.
    w_out = jnp.zeros((Hp, 2), jnp.float32)
    w_out = w_out.at[:H, 0].set(params["w3"][:, 0])
    w_out = w_out.at[H:H2, 1].set(params["w6"][:, 0])
    b_out = jnp.concatenate([params["b3"], params["b6"]], axis=1)  # (1, 2)

    def pad_lanes(x):
        return jnp.pad(x, ((0, 0), (0, Hp - x.shape[1])))

    return {
        # Weights/activations may be bf16; biases stay f32 (added on f32 dot output).
        "w_in_s": pad_lanes(w_in_s).astype(compute_dtype),
        "w_in_a": pad_lanes(w_in_a).astype(compute_dtype),
        "b_in": pad_lanes(b_in).astype(jnp.float32),
        "w_hid": w_hid.astype(compute_dtype),
        "b_hid": pad_lanes(b_hid).astype(jnp.float32),
        "w_out": w_out.astype(compute_dtype),
        "b_out": b_out.astype(jnp.float32),
    }


@functools.partial(jax.jit, static_argnames=("compute_dtype", "block_b"))
def qnetwork_forward(state, action, fused, compute_dtype=jnp.float32, block_b=512):
    B, d_s = state.shape
    d_a = action.shape[1]

    # Batch tile: multiple of 8 sublanes; 512 keeps double-buffered activation
    # tiles well under 32 MiB scoped VMEM even on v7x (64 MiB physical).
    TB = min(block_b, _round_up(B, 8))
    B_pad = _round_up(B, TB)
    if B_pad != B:
        state = jnp.pad(state, ((0, B_pad - B), (0, 0)))
        action = jnp.pad(action, ((0, B_pad - B), (0, 0)))
    state = state.astype(compute_dtype)
    action = action.astype(compute_dtype)

    def resident(arr):  # weights/biases: constant block index -> stay in VMEM
        return pl.BlockSpec(arr.shape, lambda i: (0, 0))

    out = pl.pallas_call(
        qnetwork_kernel,
        out_shape=jax.ShapeDtypeStruct((B_pad, 2), jnp.float32),
        grid_spec=pltpu.PrefetchScalarGridSpec(
            num_scalar_prefetch=0,
            grid=(B_pad // TB,),
            in_specs=[
                pl.BlockSpec((TB, d_s), lambda i: (i, 0)),
                pl.BlockSpec((TB, d_a), lambda i: (i, 0)),
                resident(fused["w_in_s"]),
                resident(fused["w_in_a"]),
                resident(fused["b_in"]),
                resident(fused["w_hid"]),
                resident(fused["b_hid"]),
                resident(fused["w_out"]),
                resident(fused["b_out"]),
            ],
            out_specs=pl.BlockSpec((TB, 2), lambda i: (i, 0)),
        ),
        compiler_params=pltpu.CompilerParams(
            dimension_semantics=("parallel",),   # v7x: shard batch tiles over 2 TCs
        ),
    )(state, action,
      fused["w_in_s"], fused["w_in_a"], fused["b_in"],
      fused["w_hid"], fused["b_hid"],
      fused["w_out"], fused["b_out"])

    q = out[:B]
    return q[:, 0:1], q[:, 1:2]


def xavier_uniform(key, fan_in, fan_out):
    # Matches torch.nn.init.xavier_uniform_ (gain=1) for a Linear layer with
    # weight shape (out, in): bound = sqrt(6 / (fan_in + fan_out)).
    bound = (6.0 / (fan_in + fan_out)) ** 0.5
    # Stored as (in, out) so the kernel computes x @ W.
    return jax.random.uniform(key, (fan_in, fan_out), jnp.float32, -bound, bound)


def init_params(key, num_inputs, num_actions, hidden_dim):
    d_in = num_inputs + num_actions
    keys = jax.random.split(key, 6)
    return {
        "w1": xavier_uniform(keys[0], d_in, hidden_dim),
        "b1": jnp.zeros((1, hidden_dim), jnp.float32),
        "w2": xavier_uniform(keys[1], hidden_dim, hidden_dim),
        "b2": jnp.zeros((1, hidden_dim), jnp.float32),
        "w3": xavier_uniform(keys[2], hidden_dim, 1),
        "b3": jnp.zeros((1, 1), jnp.float32),
        "w4": xavier_uniform(keys[3], d_in, hidden_dim),
        "b4": jnp.zeros((1, hidden_dim), jnp.float32),
        "w5": xavier_uniform(keys[4], hidden_dim, hidden_dim),
        "b5": jnp.zeros((1, hidden_dim), jnp.float32),
        "w6": xavier_uniform(keys[5], hidden_dim, 1),
        "b6": jnp.zeros((1, 1), jnp.float32),
    }


def reference_forward(state, action, params):
    xu = jnp.concatenate([state, action], axis=1)
    x1 = jax.nn.relu(xu @ params["w1"] + params["b1"])
    x1 = jax.nn.relu(x1 @ params["w2"] + params["b2"])
    q1 = x1 @ params["w3"] + params["b3"]
    x2 = jax.nn.relu(xu @ params["w4"] + params["b4"])
    x2 = jax.nn.relu(x2 @ params["w5"] + params["b5"])
    q2 = x2 @ params["w6"] + params["b6"]
    return q1, q2


if __name__ == "__main__":
    num_inputs, num_actions, hidden_dim = 8, 4, 32
    batch = 2

    key = jax.random.PRNGKey(0)
    k_params, k_state, k_action = jax.random.split(key, 3)

    params = init_params(k_params, num_inputs, num_actions, hidden_dim)
    state = jax.random.normal(k_state, (batch, num_inputs), jnp.float32)
    action = jax.random.normal(k_action, (batch, num_actions), jnp.float32)

    r1, r2 = reference_forward(state, action, params)

    # --- f32 path: exact check of the fused-kernel math against the reference ---
    fused_f32 = fuse_params(params, num_inputs, compute_dtype=jnp.float32)
    q1, q2 = qnetwork_forward(state, action, fused_f32, compute_dtype=jnp.float32)
    q1 = jax.block_until_ready(q1)
    q2 = jax.block_until_ready(q2)
    assert q1.shape == (batch, 1) and q2.shape == (batch, 1)
    assert jnp.allclose(q1, r1, atol=1e-5, rtol=1e-5)
    assert jnp.allclose(q2, r2, atol=1e-5, rtol=1e-5)

    # --- bf16 path: full-rate MXU / half HBM traffic (f32 accumulate) ---
    fused_bf16 = fuse_params(params, num_inputs, compute_dtype=jnp.bfloat16)
    p1, p2 = qnetwork_forward(state, action, fused_bf16, compute_dtype=jnp.bfloat16)
    p1 = jax.block_until_ready(p1)
    p2 = jax.block_until_ready(p2)
    assert jnp.allclose(p1, r1, atol=5e-2, rtol=5e-2)   # bf16 is a precision trade
    assert jnp.allclose(p2, r2, atol=5e-2, rtol=5e-2)

    print("KERNEL_OK")
</pallas_src>

<mosaic_0001>
module attributes {stable_mosaic.version = 11 : i64} {
  func.func @qnetwork_kernel(%arg0: i32, %arg1: memref<8x8xf32, #tpu.memory_space<vmem>>, %arg2: memref<8x4xf32, #tpu.memory_space<vmem>>, %arg3: memref<8x128xf32, #tpu.memory_space<vmem>>, %arg4: memref<4x128xf32, #tpu.memory_space<vmem>>, %arg5: memref<1x128xf32, #tpu.memory_space<vmem>>, %arg6: memref<128x128xf32, #tpu.memory_space<vmem>>, %arg7: memref<1x128xf32, #tpu.memory_space<vmem>>, %arg8: memref<128x2xf32, #tpu.memory_space<vmem>>, %arg9: memref<1x2xf32, #tpu.memory_space<vmem>>, %arg10: memref<8x2xf32, #tpu.memory_space<vmem>>) attributes {dimension_semantics = [#tpu.dimension_semantics<parallel>], iteration_bounds = array<i64: 1>, scalar_prefetch = 0 : i64, scratch_operands = 0 : i64, tpu.core_type = #tpu.core_type<tc>, window_params = [{transform_indices = @transform_0, window_bounds = array<i64: 8, 8>}, {transform_indices = @transform_1, window_bounds = array<i64: 8, 4>}, {pipeline_mode = #tpu.pipeline_mode<synchronous>, transform_indices = @transform_2, window_bounds = array<i64: 8, 128>}, {pipeline_mode = #tpu.pipeline_mode<synchronous>, transform_indices = @transform_3, window_bounds = array<i64: 4, 128>}, {pipeline_mode = #tpu.pipeline_mode<synchronous>, transform_indices = @transform_4, window_bounds = array<i64: 1, 128>}, {pipeline_mode = #tpu.pipeline_mode<synchronous>, transform_indices = @transform_5, window_bounds = array<i64: 128, 128>}, {pipeline_mode = #tpu.pipeline_mode<synchronous>, transform_indices = @transform_6, window_bounds = array<i64: 1, 128>}, {pipeline_mode = #tpu.pipeline_mode<synchronous>, transform_indices = @transform_7, window_bounds = array<i64: 128, 2>}, {pipeline_mode = #tpu.pipeline_mode<synchronous>, transform_indices = @transform_8, window_bounds = array<i64: 1, 2>}, {transform_indices = @transform_9, window_bounds = array<i64: 8, 2>}]} {
    %c0 = arith.constant 0 : index
    %c0_0 = arith.constant 0 : index
    %0 = vector.load %arg1[%c0, %c0_0] : memref<8x8xf32, #tpu.memory_space<vmem>>, vector<8x8xf32>
    %c0_1 = arith.constant 0 : index
    %c0_2 = arith.constant 0 : index
    %1 = vector.load %arg3[%c0_1, %c0_2] : memref<8x128xf32, #tpu.memory_space<vmem>>, vector<8x128xf32>
    %cst = arith.constant dense<0.000000e+00> : vector<8x128xf32>
    %2 = tpu.matmul %0, %1, %cst {dimension_numbers = #tpu.dot_dimension_numbers<[1], [0], [0], [1], [0, 0, 1, 1], [], []>} : vector<8x8xf32>, vector<8x128xf32>, vector<8x128xf32> -> vector<8x128xf32>
    %c0_3 = arith.constant 0 : index
    %c0_4 = arith.constant 0 : index
    %3 = vector.load %arg2[%c0_3, %c0_4] : memref<8x4xf32, #tpu.memory_space<vmem>>, vector<8x4xf32>
    %c0_5 = arith.constant 0 : index
    %c0_6 = arith.constant 0 : index
    %4 = vector.load %arg4[%c0_5, %c0_6] : memref<4x128xf32, #tpu.memory_space<vmem>>, vector<4x128xf32>
    %cst_7 = arith.constant dense<0.000000e+00> : vector<8x128xf32>
    %5 = tpu.matmul %3, %4, %cst_7 {dimension_numbers = #tpu.dot_dimension_numbers<[1], [0], [0], [1], [0, 0, 1, 1], [], []>} : vector<8x4xf32>, vector<4x128xf32>, vector<8x128xf32> -> vector<8x128xf32>
    %6 = arith.addf %2, %5 : vector<8x128xf32>
    %c0_8 = arith.constant 0 : index
    %c0_9 = arith.constant 0 : index
    %7 = vector.load %arg5[%c0_8, %c0_9] : memref<1x128xf32, #tpu.memory_space<vmem>>, vector<1x128xf32>
    %8 = vector.broadcast %7 : vector<1x128xf32> to vector<8x128xf32>
    %9 = arith.addf %6, %8 : vector<8x128xf32>
    %cst_10 = arith.constant 0.000000e+00 : f32
    %10 = vector.broadcast %cst_10 : f32 to vector<8x128xf32>
    %11 = arith.maximumf %9, %10 : vector<8x128xf32>
    %c0_11 = arith.constant 0 : index
    %c0_12 = arith.constant 0 : index
    %12 = vector.load %arg6[%c0_11, %c0_12] : memref<128x128xf32, #tpu.memory_space<vmem>>, vector<128x128xf32>
    %cst_13 = arith.constant dense<0.000000e+00> : vector<8x128xf32>
    %13 = tpu.matmul %11, %12, %cst_13 {dimension_numbers = #tpu.dot_dimension_numbers<[1], [0], [0], [1], [0, 0, 1, 1], [], []>} : vector<8x128xf32>, vector<128x128xf32>, vector<8x128xf32> -> vector<8x128xf32>
    %c0_14 = arith.constant 0 : index
    %c0_15 = arith.constant 0 : index
    %14 = vector.load %arg7[%c0_14, %c0_15] : memref<1x128xf32, #tpu.memory_space<vmem>>, vector<1x128xf32>
    %15 = vector.broadcast %14 : vector<1x128xf32> to vector<8x128xf32>
    %16 = arith.addf %13, %15 : vector<8x128xf32>
    %cst_16 = arith.constant 0.000000e+00 : f32
    %17 = vector.broadcast %cst_16 : f32 to vector<8x128xf32>
    %18 = arith.maximumf %16, %17 : vector<8x128xf32>
    %c0_17 = arith.constant 0 : index
    %c0_18 = arith.constant 0 : index
    %19 = vector.load %arg8[%c0_17, %c0_18] : memref<128x2xf32, #tpu.memory_space<vmem>>, vector<128x2xf32>
    %cst_19 = arith.constant dense<0.000000e+00> : vector<8x2xf32>
    %20 = tpu.matmul %18, %19, %cst_19 {dimension_numbers = #tpu.dot_dimension_numbers<[1], [0], [0], [1], [0, 0, 1, 1], [], []>} : vector<8x128xf32>, vector<128x2xf32>, vector<8x2xf32> -> vector<8x2xf32>
    %c0_20 = arith.constant 0 : index
    %c0_21 = arith.constant 0 : index
    %21 = vector.load %arg9[%c0_20, %c0_21] : memref<1x2xf32, #tpu.memory_space<vmem>>, vector<1x2xf32>
    %22 = vector.broadcast %21 : vector<1x2xf32> to vector<8x2xf32>
    %23 = arith.addf %20, %22 : vector<8x2xf32>
    %c0_22 = arith.constant 0 : index
    %c0_23 = arith.constant 0 : index
    %24 = vector.load %arg10[%c0_22, %c0_23] : memref<8x2xf32, #tpu.memory_space<vmem>>, vector<8x2xf32>
    tpu.vector_store %arg10[%c0_22, %c0_23], %23 {strides = array<i32>} : memref<8x2xf32, #tpu.memory_space<vmem>>, vector<8x2xf32>,
    return
  }
  func.func @transform_0(%arg0: i32) -> (i32, i32) {
    %c0_i32 = arith.constant 0 : i32
    %c0_i32_0 = arith.constant 0 : i32
    return %arg0, %c0_i32 : i32, i32
  }
  func.func @transform_1(%arg0: i32) -> (i32, i32) {
    %c0_i32 = arith.constant 0 : i32
    %c0_i32_0 = arith.constant 0 : i32
    return %arg0, %c0_i32 : i32, i32
  }
  func.func @transform_2(%arg0: i32) -> (i32, i32) {
    %c0_i32 = arith.constant 0 : i32
    %c0_i32_0 = arith.constant 0 : i32
    %c0_i32_1 = arith.constant 0 : i32
    return %c0_i32, %c0_i32_0 : i32, i32
  }
  func.func @transform_3(%arg0: i32) -> (i32, i32) {
    %c0_i32 = arith.constant 0 : i32
    %c0_i32_0 = arith.constant 0 : i32
    %c0_i32_1 = arith.constant 0 : i32
    return %c0_i32, %c0_i32_0 : i32, i32
  }
  func.func @transform_4(%arg0: i32) -> (i32, i32) {
    %c0_i32 = arith.constant 0 : i32
    %c0_i32_0 = arith.constant 0 : i32
    %c0_i32_1 = arith.constant 0 : i32
    return %c0_i32, %c0_i32_0 : i32, i32
  }
  func.func @transform_5(%arg0: i32) -> (i32, i32) {
    %c0_i32 = arith.constant 0 : i32
    %c0_i32_0 = arith.constant 0 : i32
    %c0_i32_1 = arith.constant 0 : i32
    return %c0_i32, %c0_i32_0 : i32, i32
  }
  func.func @transform_6(%arg0: i32) -> (i32, i32) {
    %c0_i32 = arith.constant 0 : i32
    %c0_i32_0 = arith.constant 0 : i32
    %c0_i32_1 = arith.constant 0 : i32
    return %c0_i32, %c0_i32_0 : i32, i32
  }
  func.func @transform_7(%arg0: i32) -> (i32, i32) {
    %c0_i32 = arith.constant 0 : i32
    %c0_i32_0 = arith.constant 0 : i32
    %c0_i32_1 = arith.constant 0 : i32
    return %c0_i32, %c0_i32_0 : i32, i32
  }
  func.func @transform_8(%arg0: i32) -> (i32, i32) {
    %c0_i32 = arith.constant 0 : i32
    %c0_i32_0 = arith.constant 0 : i32
    %c0_i32_1 = arith.constant 0 : i32
    return %c0_i32, %c0_i32_0 : i32, i32
  }
  func.func @transform_9(%arg0: i32) -> (i32, i32) {
    %c0_i32 = arith.constant 0 : i32
    %c0_i32_0 = arith.constant 0 : i32
    return %arg0, %c0_i32 : i32, i32
  }
}

</mosaic_0001>

<bundles_post_ra>
// kernel: qnetwork_forward.1
= control target key start
LH: loop header
LB: loop body
LE: loop exit
PB: predicated region body
PF: predicated region fallthrough
CT: control target
= control target key end

     0   :  { %vm40_vm0 = vcmask 1043456   ;;  %v565_v0 = vmov 0.0   ;;  %vm36_vm1 = vcmask 31744   ;;  %vm114_vm2 = vcmask 64512   ;;  %s758_s3 = inlined_call_operand.vmem [shape: f32[4,128], index: 3, kind: input, shape index: {}]   ;;  %s759_s2 = inlined_call_operand.vmem [shape: f32[8,128], index: 2, kind: input, shape index: {}]   ;;  %s760_s1 = inlined_call_operand.vmem [shape: f32[8,4], index: 1, kind: input, shape index: {}]   ;;  %s761_s0 = inlined_call_operand.vmem [shape: f32[8,8], index: 0, kind: input, shape index: {}]   ;;  %s762_s5 = inlined_call_operand.vmem [shape: f32[128,128], index: 5, kind: input, shape index: {}]   ;;  %s763_s7 = inlined_call_operand.vmem [shape: f32[128,2], index: 7, kind: input, shape index: {}]   ;;  %s764_s4 = inlined_call_operand.vmem [shape: f32[1,128], index: 4, kind: input, shape index: {}]   ;;  %s765_s6 = inlined_call_operand.vmem [shape: f32[1,128], index: 6, kind: input, shape index: {}]   ;;  %s766_s8 = inlined_call_operand.vmem [shape: f32[1,2], index: 8, kind: input, shape index: {}]   ;;  %s767_s9 = inlined_call_operand.vmem [shape: f32[8,2], index: 9, kind: output, shape index: {}]  }
   0x1   :  { %434 = vmatprep.subr.mxu0 %v565_v0  ;;  %439 = vmatprep.subr.mxu1 %v565_v0  ;;  %v35_v1 = vld [vmem:[%s758_s3] sm:$0xf]  ;;  %vm566_vm3 = vmmov 0   ;;  %v198_v6 = vld [vmem:[%s762_s5 + $0x8] sm:$0xff]  ;;  %v199_v8 = vld [vmem:[%s762_s5 + $0x10] sm:$0xff]  ;;  %v567_v10 = vmov 0.0|0.0  }
   0x2   :  { %v33_v2 = vld [vmem:[%s759_s2] sm:$0xff]  ;;  %435 = vmatpush3.msk.msra.mxu0 %vm40_vm0, %v35_v1  ;;  %436 = vmatprep.mubr.msk.f32.mxu0 %vm566_vm3, %v565_v0  ;;  %v200_v9 = vld [vmem:[%s762_s5 + $0x18] sm:$0xff]  ;;  %v202_v13 = vld [vmem:[%s762_s5 + $0x28] sm:$0xff]  ;;  %vm384_vm4 = vcmask 15360  }
   0x3   :  { %v34_v3 = vld [vmem:[%s760_s1] sm:$0xff]  ;;  %440 = vmatpush3.msra.mxu1 %v33_v2  ;;  %441 = vmatprep.mubr.msk.f32.mxu1 %vm566_vm3, %v565_v0  ;;  %v518_v11 = vpack.c.bf16 %v200_v9, %v199_v8  ;;  %v203_v15 = vld [vmem:[%s762_s5 + $0x30] sm:$0xff]  ;;  %v204_v16 = vld [vmem:[%s762_s5 + $0x38] sm:$0xff] }
   0x4   :  { %v32_v4 = vld [vmem:[%s761_s0] sm:$0xff]  ;;  %437 = vmatmul.mubr.msk.f32.vlgmr.msra.gmra.mrb[0].mxu0 %vm36_vm1, %v34_v3  ;;  %514 = vmatprep.subr.bf16.mxu0 %v567_v10  ;;  %v524_v17 = vpack.c.bf16 %v204_v16, %v203_v15  ;;  %v206_v19 = vld [vmem:[%s762_s5 + $0x48] sm:$0xff]  ;;  %v207_v21 = vld [vmem:[%s762_s5 + $0x50] sm:$0xff] }
   0x5   :  { %v197_v5 = vld [vmem:[%s762_s5] sm:$0xff]  ;;  %442 = vmatmul.mubr.msk.f32.vlgmr.msra.gmra.mrb[0].mxu1 %vm114_vm2, %v32_v4  ;;  %476 = vmatprep.mubr.msk.f32.mxu0 %vm566_vm3, %v565_v0  ;;  %v208_v22 = vld [vmem:[%s762_s5 + $0x58] sm:$0xff]  ;;  %v210_v25 = vld [vmem:[%s762_s5 + $0x68] sm:$0xff] }
   0x6   :  { %v515_v7 = vpack.c.bf16 %v198_v6, %v197_v5  ;;  %538 = vmatprep.subr.bf16.mxu1 %v567_v10  ;;  %v201_v12 = vld [vmem:[%s762_s5 + $0x20] sm:$0xff]  ;;  %511 = vmatprep.mubr.msk.f32.mxu1 %vm566_vm3, %v565_v0  ;;  %v530_v23 = vpack.c.bf16 %v208_v22, %v207_v21  ;;  %v211_v27 = vld [vmem:[%s762_s5 + $0x70] sm:$0xff]  ;;  %v212_v28 = vld [vmem:[%s762_s5 + $0x78] sm:$0xff] }
   0x7   :  { %v521_v14 = vpack.c.bf16 %v202_v13, %v201_v12  ;;  %v205_v18 = vld [vmem:[%s762_s5 + $0x40] sm:$0xff]  ;;  %v536_v29 = vpack.c.bf16 %v212_v28, %v211_v27  ;;  %v292_v31 = vld [vmem:[%s763_s7 + $0x8] sm:$0xff]  ;;  %v293_v32 = vld [vmem:[%s763_s7 + $0x10] sm:$0xff] }
   0x8   :  { %516 = vmatpush3.bf16.msra.mxu0 %v515_v7  ;;  %v527_v20 = vpack.c.bf16 %v206_v19, %v205_v18  ;;  %v209_v24 = vld [vmem:[%s762_s5 + $0x60] sm:$0xff]  ;;  %v294_v34 = vld [vmem:[%s763_s7 + $0x18] sm:$0xff]  ;;  %v296_v37 = vld [vmem:[%s763_s7 + $0x28] sm:$0xff] }
   0x9   :  { %517 = vmatprep.subr.bf16.mxu0 %v567_v10  ;;  %v533_v26 = vpack.c.bf16 %v210_v25, %v209_v24  ;;  %v291_v30 = vld [vmem:[%s763_s7] sm:$0xff]  ;;  %v542_v35 = vpack.c.bf16 %v294_v34, %v293_v32  ;;  %v297_v39 = vld [vmem:[%s763_s7 + $0x30] sm:$0xff]  ;;  %v298_v40 = vld [vmem:[%s763_s7 + $0x38] sm:$0xff] }
   0xa   :  { %v539_v33 = vpack.c.bf16 %v292_v31, %v291_v30  ;;  %v295_v36 = vld [vmem:[%s763_s7 + $0x20] sm:$0xff]  ;;  %v548_v41 = vpack.c.bf16 %v298_v40, %v297_v39  ;;  %v300_v43 = vld [vmem:[%s763_s7 + $0x48] sm:$0xff]  ;;  %v301_v45 = vld [vmem:[%s763_s7 + $0x50] sm:$0xff] }
   0xb   :  { %v545_v38 = vpack.c.bf16 %v296_v37, %v295_v36  ;;  %v299_v42 = vld [vmem:[%s763_s7 + $0x40] sm:$0xff]  ;;  %v302_v46 = vld [vmem:[%s763_s7 + $0x58] sm:$0xff]  ;;  %v304_v49 = vld [vmem:[%s763_s7 + $0x68] sm:$0xff] }
   0xc   :  { %519 = vmatpush3.bf16.msra.mxu0 %v518_v11  ;;  %540 = vmatpush3.bf16.msra.mxu1 %v539_v33  ;;  %v551_v44 = vpack.c.bf16 %v300_v43, %v299_v42  ;;  %v554_v47 = vpack.c.bf16 %v302_v46, %v301_v45  ;;  %v303_v48 = vld [vmem:[%s763_s7 + $0x60] sm:$0xff]  ;;  %v305_v59 = vld [vmem:[%s763_s7 + $0x70] sm:$0xff]  ;;  %v306_v60 = vld [vmem:[%s763_s7 + $0x78] sm:$0xff] }
   0xd   :  { %520 = vmatprep.subr.bf16.mxu0 %v567_v10  ;;  %541 = vmatprep.subr.bf16.mxu1 %v567_v10  ;;  %v557_v50 = vpack.c.bf16 %v304_v49, %v303_v48  ;;  %v393_v53 = vld [vmem:[%s764_s4] ss:$0 sm:$0xff]  ;;  %v560_v61 = vpack.c.bf16 %v306_v60, %v305_v59 }
   0xe   :  { %v394_v62 = vld [vmem:[%s765_s6] ss:$0 sm:$0xff] }
   0xf   :  { %v395_v3 = vld [vmem:[%s766_s8] ss:$0 sm:$0xff] }
  0x10   :  { %522 = vmatpush3.bf16.msra.mxu0 %v521_v14  ;;  %543 = vmatpush3.bf16.msra.mxu1 %v542_v35 }
  0x11   :  { %523 = vmatprep.subr.bf16.mxu0 %v567_v10  ;;  %544 = vmatprep.subr.bf16.mxu1 %v567_v10 }
  0x14   :  { %525 = vmatpush3.bf16.msra.mxu0 %v524_v17  ;;  %546 = vmatpush3.bf16.msra.mxu1 %v545_v38 }
  0x15   :  { %526 = vmatprep.subr.bf16.mxu0 %v567_v10  ;;  %547 = vmatprep.subr.bf16.mxu1 %v567_v10 }
  0x18   :  { %528 = vmatpush3.bf16.msra.mxu0 %v527_v20  ;;  %549 = vmatpush3.bf16.msra.mxu1 %v548_v41 }
  0x19   :  { %529 = vmatprep.subr.bf16.mxu0 %v567_v10  ;;  %550 = vmatprep.subr.bf16.mxu1 %v567_v10 }
  0x1c   :  { %531 = vmatpush3.bf16.msra.mxu0 %v530_v23  ;;  %552 = vmatpush3.bf16.msra.mxu1 %v551_v44 }
  0x1d   :  { %532 = vmatprep.subr.bf16.mxu0 %v567_v10  ;;  %553 = vmatprep.subr.bf16.mxu1 %v567_v10 }
  0x20   :  { %534 = vmatpush3.bf16.msra.mxu0 %v533_v26  ;;  %555 = vmatpush3.bf16.msra.mxu1 %v554_v47 }
  0x21   :  { %535 = vmatprep.subr.bf16.mxu0 %v567_v10  ;;  %556 = vmatprep.subr.bf16.mxu1 %v567_v10 }
  0x24   :  { %537 = vmatpush3.bf16.msra.mxu0 %v536_v29  ;;  %558 = vmatpush3.bf16.msra.mxu1 %v557_v50 }
  0x25   :  { %559 = vmatprep.subr.bf16.mxu1 %v567_v10 }
  0x28   :  { %561 = vmatpush3.bf16.msra.mxu1 %v560_v61 }
  0xd7   :  { %v110_v51 = vpop.f32.mrb[0].mxu0 }
  0xd8   :  { %v184_v52 = vpop.f32.mrb[0].mxu1  ;;  %v438_v55 = vpop.f32.mrb[1].mxu0 }
  0xd9   :  { %v185_v54 = vadd.f32 %v184_v52, %v110_v51  ;;  %v443_v56 = vpop.f32.mrb[1].mxu1 }
  0xdb   :  { %v195_v57 = vadd.f32 %v393_v53, %v185_v54 }
  0xdd   :  { %v196_v58 = vmax.f32 %v195_v57, 0.0 }
  0xdf   :  { %477 = vmatmul.mubr.f32.vlgmr.msra.gmra.mrb[2].mxu0 %v196_v58 }
 0x1b2   :  { %v286_v63 = vpop.f32.mrb[2].mxu0 }
 0x1b3   :  { %v287_v0 = vadd.f32 %v394_v62, %v286_v63  ;;  %v478_v1 = vpop.f32.mrb[3].mxu0 }
 0x1b5   :  { %v290_v2 = vmax.f32 %v287_v0, 0.0 }
 0x1b7   :  { %512 = vmatmul.mubr.f32.vlgmr.msra.gmra.mrb[2].mxu1 %v290_v2 }
 0x28a   :  { %v380_v4 = vpop.f32.mrb[2].mxu1 }
 0x28b   :  { %v381_v5 = vadd.f32 %v395_v3, %v380_v4  ;;  %v513_v6 = vpop.f32.mrb[3].mxu1 }
 0x28d   :  { %385 = vst.msk [vmem:[%s767_s9] sm:$0xff] %vm384_vm4, %v381_v5 }

</bundles_post_ra>
